<compile_context>
chip_gen: v6e
topology: v6e:2x2x1
jax: 0.10.0
libtpu: 0.0.40
codegen_flags: <defaults>
</compile_context>

<pallas_src>
import functools
import math

import jax
import jax.numpy as jnp
from jax.experimental import pallas as pl
from jax.experimental.pallas import tpu as pltpu


def _timestep_encoder_kernel(t_ref, tbl_ref, w_ref, o_ref, *, dim):
    half = dim // 2

    # Lane-index mask selecting the cos half of the embedding (cols >= half).
    col = jax.lax.broadcasted_iota(jnp.int32, (1, dim), 1)   # [1, D]
    is_cos = col >= half

    # Packed small-parameter table: row 0 = tiled freqs [f, f], row 1 = b1,
    # row 2 = b2.  Static sublane slices — no extra DMAs, no data movement.
    freq2 = tbl_ref[0:1, :]                                   # [1, D]
    b1 = tbl_ref[1:2, :]                                      # [1, D]
    b2 = tbl_ref[2:3, :]                                      # [1, D]

    # Sinusoidal embedding:  ang[b, h] = t[b] * freq2[h]
    #   emb = concat(sin(t*f), cos(t*f))  realized as a lane-select between
    #   exact sin and exact cos (both full-width passes on the idle EUP).
    ang = t_ref[...] * freq2                                  # [B,1]*[1,D] -> [B,D]
    emb = jnp.where(is_cos, jnp.cos(ang), jnp.sin(ang))       # [B, D]

    # Packed weights: rows [:D] = W1, rows [D:] = W2 (both [in, out]).
    w1 = w_ref[:dim, :]
    w2 = w_ref[dim:, :]

    # First Linear + exact (erf-based) GELU, matching torch.nn.GELU() default.
    h = jnp.dot(emb, w1, preferred_element_type=jnp.float32) + b1
    inv_sqrt2 = jnp.float32(1.0 / math.sqrt(2.0))
    g = jnp.float32(0.5) * h * (jnp.float32(1.0) + jax.lax.erf(h * inv_sqrt2))

    # Second Linear.
    o_ref[...] = jnp.dot(g, w2, preferred_element_type=jnp.float32) + b2


def pack_timestep_encoder_params(w1, b1, w2, b2, max_period=10000.0):
    """Pack params once (reused across calls) into two arrays:
         tbl [3, D]  : row0 = tiled frequency table, row1 = b1, row2 = b2
         w   [2D, D] : W1 stacked on W2 (both stored [in, out]).
    """
    dim = w1.shape[0]
    half = dim // 2
    # Same formula as the PyTorch module (note the (half - 1) denominator).
    freqs = jnp.exp(jnp.arange(half, dtype=jnp.float32)
                    * -(math.log(max_period) / (half - 1)))
    freq2 = jnp.concatenate([freqs, freqs]).reshape(1, dim)
    tbl = jnp.concatenate(
        [freq2, b1.reshape(1, dim).astype(jnp.float32),
         b2.reshape(1, dim).astype(jnp.float32)], axis=0)      # [3, D]
    w = jnp.concatenate([w1.astype(jnp.float32),
                         w2.astype(jnp.float32)], axis=0)      # [2D, D]
    return tbl, w


def timestep_encoder(timesteps, tbl, w_packed):
    """timesteps: [B] float. tbl: [3, D] packed table. w_packed: [2D, D]."""
    B = timesteps.shape[0]
    dim = w_packed.shape[1]
    t2 = timesteps.reshape(B, 1).astype(jnp.float32)

    vmem = pl.BlockSpec(memory_space=pltpu.MemorySpace.VMEM)
    return pl.pallas_call(
        functools.partial(_timestep_encoder_kernel, dim=dim),
        out_shape=jax.ShapeDtypeStruct((B, dim), jnp.float32),
        in_specs=[vmem, vmem, vmem],
        out_specs=vmem,
    )(t2, tbl, w_packed)


def _reference(timesteps, w1, b1, w2, b2, dim, max_period=10000.0):
    """Plain-JAX reference mirroring the PyTorch forward (concat(sin, cos))."""
    half = dim // 2
    freqs = jnp.exp(jnp.arange(half, dtype=jnp.float32)
                    * -(math.log(max_period) / (half - 1)))
    ang = timesteps[:, None].astype(jnp.float32) * freqs[None, :]
    emb = jnp.concatenate([jnp.sin(ang), jnp.cos(ang)], axis=-1)
    h = emb @ w1 + b1
    g = 0.5 * h * (1.0 + jax.lax.erf(h * jnp.float32(1.0 / math.sqrt(2.0))))
    return g @ w2 + b2


if __name__ == "__main__":
    # Small shapes consistent with the module: encoder_embed_dim = D = 32, B = 8.
    B = 8
    D = 32          # args.encoder_embed_dim
    MAX_PERIOD = 10000.0

    key = jax.random.PRNGKey(0)
    k_t, k_w1, k_b1, k_w2, k_b2 = jax.random.split(key, 5)

    # Diffusion timesteps (float values of timestep indices).
    timesteps = jax.random.randint(k_t, (B,), 0, 1000).astype(jnp.float32)

    # Deterministic synthetic Linear params, PyTorch-style uniform(-1/sqrt(D), 1/sqrt(D)),
    # stored as [in, out] (transposed from nn.Linear's [out, in]).
    bound = 1.0 / math.sqrt(D)
    w1 = jax.random.uniform(k_w1, (D, D), jnp.float32, -bound, bound)
    b1 = jax.random.uniform(k_b1, (1, D), jnp.float32, -bound, bound)
    w2 = jax.random.uniform(k_w2, (D, D), jnp.float32, -bound, bound)
    b2 = jax.random.uniform(k_b2, (1, D), jnp.float32, -bound, bound)

    # Pack parameters once (frequency table + biases, and the two weight mats).
    tbl, w_packed = pack_timestep_encoder_params(w1, b1, w2, b2, MAX_PERIOD)

    out = timestep_encoder(timesteps, tbl, w_packed)
    out = jax.block_until_ready(out)

    ref = _reference(timesteps, w1, b1, w2, b2, D, MAX_PERIOD)
    assert out.shape == (B, D) and out.dtype == jnp.float32
    # Exact cos is used now (no sin(x + pi/2) phase drift); tolerance only has
    # to cover ulp-level differences between the Pallas and XLA sin/cos/erf.
    assert jnp.allclose(out, ref, atol=2e-4, rtol=1e-4), "mismatch vs reference"

    print("KERNEL_OK")
</pallas_src>

<mosaic_0001>
module attributes {stable_mosaic.version = 11 : i64} {
  func.func @_timestep_encoder_kernel(%arg0: memref<8x1xf32, #tpu.memory_space<vmem>>, %arg1: memref<3x32xf32, #tpu.memory_space<vmem>>, %arg2: memref<64x32xf32, #tpu.memory_space<vmem>>, %arg3: memref<8x32xf32, #tpu.memory_space<vmem>>) attributes {dimension_semantics = [], scalar_prefetch = 0 : i64, scratch_operands = 0 : i64, tpu.core_type = #tpu.core_type<tc>} {
    %0 = tpu.iota {dimensions = array<i32: 1>} : vector<1x32xi32>
    %c16_i32 = arith.constant 16 : i32
    %1 = vector.broadcast %c16_i32 : i32 to vector<1x32xi32>
    %2 = arith.cmpi sge, %0, %1 : vector<1x32xi32>
    %c0 = arith.constant 0 : index
    %c0_0 = arith.constant 0 : index
    %3 = vector.load %arg1[%c0, %c0_0] : memref<3x32xf32, #tpu.memory_space<vmem>>, vector<1x32xf32>
    %c1 = arith.constant 1 : index
    %c0_1 = arith.constant 0 : index
    %4 = vector.load %arg1[%c1, %c0_1] : memref<3x32xf32, #tpu.memory_space<vmem>>, vector<1x32xf32>
    %c2 = arith.constant 2 : index
    %c0_2 = arith.constant 0 : index
    %5 = vector.load %arg1[%c2, %c0_2] : memref<3x32xf32, #tpu.memory_space<vmem>>, vector<1x32xf32>
    %c0_3 = arith.constant 0 : index
    %c0_4 = arith.constant 0 : index
    %6 = vector.load %arg0[%c0_3, %c0_4] : memref<8x1xf32, #tpu.memory_space<vmem>>, vector<8x1xf32>
    %7 = vector.broadcast %6 : vector<8x1xf32> to vector<8x32xf32>
    %8 = vector.broadcast %3 : vector<1x32xf32> to vector<8x32xf32>
    %9 = arith.mulf %7, %8 : vector<8x32xf32>
    %10 = math.cos %9 : vector<8x32xf32>
    %11 = math.sin %9 : vector<8x32xf32>
    %12 = vector.shape_cast %2 : vector<1x32xi1> to vector<1x32xi1>
    %13 = vector.broadcast %12 : vector<1x32xi1> to vector<8x32xi1>
    %14 = arith.select %13, %10, %11 : vector<8x32xi1>, vector<8x32xf32>
    %c0_5 = arith.constant 0 : index
    %c0_6 = arith.constant 0 : index
    %15 = vector.load %arg2[%c0_5, %c0_6] : memref<64x32xf32, #tpu.memory_space<vmem>>, vector<32x32xf32>
    %c32 = arith.constant 32 : index
    %c0_7 = arith.constant 0 : index
    %16 = vector.load %arg2[%c32, %c0_7] : memref<64x32xf32, #tpu.memory_space<vmem>>, vector<32x32xf32>
    %cst = arith.constant dense<0.000000e+00> : vector<8x32xf32>
    %17 = tpu.matmul %14, %15, %cst {dimension_numbers = #tpu.dot_dimension_numbers<[1], [0], [0], [1], [0, 0, 1, 1], [], []>} : vector<8x32xf32>, vector<32x32xf32>, vector<8x32xf32> -> vector<8x32xf32>
    %18 = vector.broadcast %4 : vector<1x32xf32> to vector<8x32xf32>
    %19 = arith.addf %17, %18 : vector<8x32xf32>
    %cst_8 = arith.constant 5.000000e-01 : f32
    %20 = vector.broadcast %cst_8 : f32 to vector<8x32xf32>
    %21 = arith.mulf %20, %19 : vector<8x32xf32>
    %cst_9 = arith.constant 0.707106769 : f32
    %22 = vector.broadcast %cst_9 : f32 to vector<8x32xf32>
    %23 = arith.mulf %19, %22 : vector<8x32xf32>
    %24 = math.erf %23 : vector<8x32xf32>
    %cst_10 = arith.constant 1.000000e+00 : f32
    %25 = vector.broadcast %cst_10 : f32 to vector<8x32xf32>
    %26 = arith.addf %25, %24 : vector<8x32xf32>
    %27 = arith.mulf %21, %26 : vector<8x32xf32>
    %cst_11 = arith.constant dense<0.000000e+00> : vector<8x32xf32>
    %28 = tpu.matmul %27, %16, %cst_11 {dimension_numbers = #tpu.dot_dimension_numbers<[1], [0], [0], [1], [0, 0, 1, 1], [], []>} : vector<8x32xf32>, vector<32x32xf32>, vector<8x32xf32> -> vector<8x32xf32>
    %29 = vector.broadcast %5 : vector<1x32xf32> to vector<8x32xf32>
    %30 = arith.addf %28, %29 : vector<8x32xf32>
    %c0_12 = arith.constant 0 : index
    %c0_13 = arith.constant 0 : index
    %31 = vector.load %arg3[%c0_12, %c0_13] : memref<8x32xf32, #tpu.memory_space<vmem>>, vector<8x32xf32>
    tpu.vector_store %arg3[%c0_12, %c0_13], %30 {strides = array<i32>} : memref<8x32xf32, #tpu.memory_space<vmem>>, vector<8x32xf32>,
    return
  }
}

</mosaic_0001>

<bundles_post_ra>
// kernel: tpu_custom_call.1
= control target key start
LH: loop header
LB: loop body
LE: loop exit
PB: predicated region body
PF: predicated region fallthrough
CT: control target
= control target key end

     0   :  { %v513_v1 = vmov 0   ;;  %s617_s0 = inlined_call_operand.vmem [shape: f32[8,1], index: 0, kind: input, shape index: {}]   ;;  %s618_s1 = inlined_call_operand.vmem [shape: f32[3,32], index: 1, kind: input, shape index: {}]   ;;  %s619_s2 = inlined_call_operand.vmem [shape: f32[64,32], index: 2, kind: input, shape index: {}]   ;;  %s620_s3 = inlined_call_operand.hbm [shape: f32[8,32], index: 3, kind: output, shape index: {}]  }
   0x1   :  { %v21_v0 = vld [vmem:[%s617_s0] sm:$0xff]  ;;  %484 = vset.pattern.permute.xlu0 %v513_v1 }
   0x2   :  { %24 = vperm.xlu0 %484, %v21_v0  }
   0x3   :  { %8 = vsyncpa [#allocation3], 0  ;;  %v245_v2 = vld [vmem:[%s619_s2 + $0x18] sm:$0xff]  ;;  %v514_v3 = vmov 0.0   ;;  %v244_v4 = vld [vmem:[%s619_s2 + $0x10] sm:$0xff]  ;;  %vm515_vm0 = vmmov 0  }
   0x4   :  { %448 = vmatprep.subr.mxu0 %v514_v3  ;;  %456 = vmatprep.mubr.msk.f32.mxu0 %vm515_vm0, %v514_v3  ;;  %v243_v5 = vld [vmem:[%s619_s2 + $0x8] sm:$0xff]  ;;  %v242_v6 = vld [vmem:[%s619_s2] sm:$0xff]  ;;  %v516_v20 = vmov 683565275   ;;  %v517_v22 = vmov 2475754826  }
   0x5   :  { %449 = vmatpush3.msra.mxu0 %v245_v2  ;;  %459 = vmatprep.subr.mxu1 %v514_v3  ;;  %v425_v7 = vld [vmem:[%s618_s1] ss:$0 sm:$0xff]  ;;  %v518_v25 = vmov 2131351028   ;;  %v519_v28 = vmov 2102212464  }
   0x6   :  { %450 = vmatprep.subr.mxu0 %v514_v3  ;;  %467 = vmatprep.mubr.msk.f32.mxu1 %vm515_vm0, %v514_v3  ;;  %v520_v31 = vmov 920167782   ;;  %v521_v34 = vmov 1326507024   ;;  %s522_s7 = smov [#allocation2]  }
   0x7   :  { %451 = vmatpush3.msra.mxu0 %v244_v4  ;;  %s417_s8 = sshll.u32 %s522_s7, 4  ;;  %s418_s8 = int_to_ptr.vmem [resolvable:$true] %s417_s8 }
   0x8   :  { %452 = vmatprep.subr.mxu0 %v514_v3  ;;  %s491_s9 = scalar_lea.vmem %s418_s8, 128  ;;  %p496_p1 = scmp.lt.s32.totalorder %s418_s8, %s418_s8 }
   0x9   :  { %453 = vmatpush3.msra.mxu0 %v243_v5  ;;  %p492_p0 = scmp.ne.s32.totalorder %s418_s8, %s491_s9  ;;  %p497_p2 = scmp.lt.s32.totalorder %s491_s9, %s491_s9 }
   0xa   :  { %454 = vmatprep.subr.mxu0 %v514_v3 }
   0xb   :  { %455 = vmatpush3.msra.mxu0 %v242_v6  ;;  %p498_p3 = por %p497_p2, %p496_p1 }
   0xd   :  { %p499_p4 = pnand %p498_p3, %p492_p0 }
  0x7d   :  { %v25_v8 = vpop.permute.xlu0 %24 }
  0x7e   :  { %v568_v9 = vmul.f32 %v425_v7, %v25_v8 }
  0x80   :  { %v35_v10 = vand.u32 2139095040, %v568_v9  ;;  %v32_v14 = vand.u32 2147483647, %v568_v9  ;;  %vm34_vm8 = vcmp.lt.s32.totalorder %v568_v9, 0 }
  0x82   :  { %v36_v11 = vshrl.u32 %v35_v10, 23  ;;  %v39_v17 = vand.u32 8388607, %v32_v14  ;;  %vm33_vm9 = vcmp.le.f32.partialorder %v32_v14, 0.7853982 }
  0x84   :  { %v426_v12 = vadd.s32 4294967169, %v36_v11  ;;  %v40_v36 = vor.u32 8388608, %v39_v17 }
  0x86   :  { %v42_v13 = vadd.s32 1, %v426_v12  ;;  %v80_v50 = vshll.u32 %v40_v36, 8 }
  0x88   :  { %vm43_vm1 = vcmp.gt.s32.totalorder %v42_v13, 0 }
  0x89   :  { %v44_v15 = vsel %vm43_vm1, %v42_v13, 0  ;;  %vm124_vm1 = vweird.f32 %v568_v9 }
  0x8a   :  { %v46_v16 = vand.u32 31, %v44_v15  ;;  %v45_v19 = vshrl.u32 %v44_v15, 5 }
  0x8c   :  { %v47_v18 = vsub.s32 32, %v46_v16  ;;  %v49_v21 = vshll.u32 %v516_v20, %v46_v16  ;;  %v52_v23 = vshll.u32 %v517_v22, %v46_v16  ;;  %v55_v27 = vshll.u32 %v518_v25, %v46_v16 }
  0x8d   :  { %v58_v30 = vshll.u32 %v519_v28, %v46_v16  ;;  %v61_v33 = vshll.u32 %v520_v31, %v46_v16  ;;  %vm64_vm2 = vcmp.lt.s32.totalorder %v45_v19, 1  ;;  %vm67_vm3 = vcmp.lt.s32.totalorder %v45_v19, 4 }
  0x8e   :  { %v50_v24 = vshrl.u32 %v517_v22, %v47_v18  ;;  %v53_v26 = vshrl.u32 %v518_v25, %v47_v18  ;;  %v56_v29 = vshrl.u32 %v519_v28, %v47_v18  ;;  %v59_v32 = vshrl.u32 %v520_v31, %v47_v18 }
  0x8f   :  { %v62_v35 = vshrl.u32 %v521_v34, %v47_v18  ;;  %v48_v45 = vshrl.u32 %v516_v20, %v47_v18  ;;  %vm66_vm4 = vcmp.lt.s32.totalorder %v45_v19, 3  ;;  %vm65_vm5 = vcmp.lt.s32.totalorder %v45_v19, 2 }
  0x90   :  { %v51_v37 = vor.u32 %v50_v24, %v49_v21  ;;  %v54_v38 = vor.u32 %v53_v26, %v52_v23  ;;  %v57_v39 = vor.u32 %v56_v29, %v55_v27  ;;  %v60_v40 = vor.u32 %v59_v32, %v58_v30 }
  0x91   :  { %v63_v41 = vor.u32 %v62_v35, %v61_v33  ;;  %v15_v30 = vlaneseq }
  0x92   :  { %v69_v42 = vsel %vm67_vm3, %v57_v39, 2102212464  ;;  %v72_v43 = vsel %vm64_vm2, %v51_v37, %v54_v38  ;;  %v76_v44 = vsel %vm64_vm2, %v54_v38, %v57_v39  ;;  %v73_v46 = vsel %vm67_vm3, %v60_v40, 920167782 }
  0x93   :  { %v77_v47 = vsel %vm67_vm3, %v63_v41, 1326507024  ;;  %v74_v48 = vsel %vm66_vm4, %v57_v39, %v73_v46  ;;  %v68_v51 = vsel %vm64_vm2, %v48_v45, %v51_v37  ;;  %v70_v52 = vsel %vm66_vm4, %v54_v38, %v69_v42 }
  0x94   :  { %v78_v49 = vsel %vm66_vm4, %v60_v40, %v77_v47  ;;  %v75_v53 = vsel %vm65_vm5, %v72_v43, %v74_v48  ;;  %v71_v59 = vsel %vm65_vm5, %v68_v51, %v70_v52  ;;  %v16_v32 = vand.u32 127, %v15_v30  ;;  %v249_v47 = vld [vmem:[%s619_s2 + $0x38] sm:$0xff]  ;;  %v247_v48 = vld [vmem:[%s619_s2 + $0x28] sm:$0xff] }
  0x95   :  { %v79_v54 = vsel %vm65_vm5, %v76_v44, %v78_v49  ;;  %v577_v57 = vmul.u32.u64.low %v80_v50, %v75_v53  ;;  %v578_v58 = vmul.u32.u64.high %v80_v50, %v75_v53, %v577_v57  ;;  %v87_v61 = vmul.u32 %v80_v50, %v71_v59  ;;  %460 = vmatpush3.msra.mxu1 %v249_v47  ;;  %v246_v49 = vld [vmem:[%s619_s2 + $0x20] sm:$0xff] }
  0x96   :  { %v574_v55 = vmul.u32.u64.low %v80_v50, %v79_v54  ;;  %v575_v56 = vmul.u32.u64.high %v80_v50, %v79_v54, %v574_v55  ;;  %vm17_vm10 = vcmp.ge.s32.totalorder %v16_v32, 16  ;;  %vm254_vm2 = vcmask 261120   ;;  %461 = vmatprep.subr.mxu1 %v514_v3  ;;  %v434_v50 = vld [vmem:[%s618_s1 + $0x1] ss:$0 sm:$0xff] }
  0x97   :  { %v90_v60 = vadd.s32 1, %v578_v58 }
  0x98   :  { %vm89_vm6 = vc.u32 %v575_v56, %v577_v57  ;;  %v88_v11 = vadd.s32 %v577_v57, %v575_v56 }
  0x99   :  { %v91_v62 = vsel %vm89_vm6, %v90_v60, %v578_v58 }
  0x9a   :  { %v92_v63 = vadd.s32 %v91_v62, %v87_v61 }
  0x9c   :  { %v93_v0 = vadd.s32 536870912, %v92_v63 }
  0x9e   :  { %v94_v1 = vshrl.u32 %v93_v0, 30 }
  0xa0   :  { %v95_v2 = vshll.u32 %v94_v1, 30  ;;  %v118_v25 = vsub.s32 4, %v94_v1 }
  0xa2   :  { %v96_v4 = vsub.s32 %v92_v63, %v95_v2  ;;  %v119_v28 = vsel %vm34_vm8, %v118_v25, %v94_v1 }
  0xa3   :  { %v121_v29 = vsel %vm33_vm9, 0, %v119_v28 }
  0xa4   :  { %v98_v5 = vsub.s32 0, %v96_v4  ;;  %v228_v31 = vadd.s32 3, %v121_v29  ;;  %v125_v33 = vand.u32 3, %v121_v29 }
  0xa6   :  { %v427_v6 = vmin.u32 %v98_v5, %v96_v4  ;;  %v229_v34 = vand.u32 3, %v228_v31  ;;  %vm130_vm11 = vcmp.eq.s32.totalorder %v125_v33, 2  ;;  %vm127_vm13 = vcmp.eq.s32.totalorder %v125_v33, 0 }
  0xa7   :  { %vm126_vm15 = vcmp.lt.s32.totalorder %v125_v33, 2 }
  0xa8   :  { %v100_v7 = vclz %v427_v6  ;;  %vm234_vm12 = vcmp.eq.s32.totalorder %v229_v34, 2  ;;  %vm231_vm14 = vcmp.eq.s32.totalorder %v229_v34, 0  ;;  %vm230_vm0 = vcmp.lt.s32.totalorder %v229_v34, 2 }
  0xaa   :  { %v428_v8 = vadd.s32 4294967294, %v100_v7 }
  0xac   :  { %vm429_vm7 = vcmp.lt.s32.totalorder %v428_v8, 0 }
  0xad   :  { %v103_v10 = vsel %vm429_vm7, 0, %v428_v8 }
  0xae   :  { %v104_v12 = vsub.s32 32, %v103_v10  ;;  %v108_v13 = vsub.s32 4294967266, %v103_v10  ;;  %v105_v15 = vshll.u32 %v96_v4, %v103_v10 }
  0xb0   :  { %v106_v16 = vshrl.u32 %v88_v11, %v104_v12  ;;  %v109_v17 = vadd.s32 127, %v108_v13 }
  0xb2   :  { %v107_v18 = vor.u32 %v106_v16, %v105_v15  ;;  %v110_v19 = vshll.u32 %v109_v17, 23 }
  0xb4   :  { %v111_v20 = vor.u32 4788187, %v110_v19  ;;  %v114_v22 = vcvt.s32.f32 %v107_v18 }
  0xb6   :  { %v112_v21 = vand.u32 2147483647, %v111_v20 }
  0xb8   :  { %v115_v23 = vmul.f32 %v114_v22, %v112_v21 }
  0xba   :  { %v116_v24 = vxor.u32 2147483648, %v115_v23 }
  0xbc   :  { %v117_v26 = vsel %vm34_vm8, %v116_v24, %v115_v23 }
  0xbd   :  { %v120_v27 = vsel %vm33_vm9, %v568_v9, %v117_v26  ;;  %v248_v9 = vld [vmem:[%s619_s2 + $0x30] sm:$0xff] }
  0xbe   :  { %485 = vcosq.f32 %v120_v27  ;;  %462 = vmatpush3.msra.mxu1 %v248_v9 }
  0xbf   :  { %487 = vsinq.f32 %v120_v27  ;;  %463 = vmatprep.subr.mxu1 %v514_v3 }
  0xc0   :  { %464 = vmatpush3.msra.mxu1 %v247_v48 }
  0xc1   :  { %465 = vmatprep.subr.mxu1 %v514_v3  ;;  %v436_v3 = vld [vmem:[%s618_s1 + $0x2] ss:$0 sm:$0xff] }
  0xc2   :  { %466 = vmatpush3.msra.mxu1 %v246_v49 }
  0xcb   :  { %v486_v35 = vpop.eup %485 }
  0xcc   :  { %v488_v36 = vpop.eup %487  ;;  %v131_v37 = vxor.u32 2147483648, %v486_v35 }
  0xcd   :  { %v128_v38 = vxor.u32 2147483648, %v488_v36 }
  0xce   :  { %v132_v14 = vsel %vm130_vm11, %v131_v37, %v488_v36  ;;  %v236_v39 = vsel %vm234_vm12, %v131_v37, %v488_v36 }
  0xcf   :  { %v129_v40 = vsel %vm127_vm13, %v486_v35, %v128_v38  ;;  %v233_v41 = vsel %vm231_vm14, %v486_v35, %v128_v38 }
  0xd0   :  { %v133_v42 = vsel %vm126_vm15, %v129_v40, %v132_v14  ;;  %v237_v43 = vsel %vm230_vm0, %v233_v41, %v236_v39 }
  0xd1   :  { %v134_v44 = vsel %vm124_vm1, nan, %v133_v42  ;;  %v238_v45 = vsel %vm124_vm1, nan, %v237_v43 }
  0xd2   :  { %v241_v46 = vsel %vm17_vm10, %v134_v44, %v238_v45 }
  0xd3   :  { %457 = vmatmul.mubr.msk.f32.vlgmr.msra.gmra.mxu0 %vm254_vm2, %v241_v46 }
 0x193   :  { %v324_v51 = vpop.f32.mrf.mxu0 }
 0x194   :  { %v325_v52 = vadd.f32 %v434_v50, %v324_v51 }
 0x195   :  { %v458_v53 = vpop.f32.mrf.mxu0 }
 0x196   :  { %v329_v54 = vmul.f32 0.70710677, %v325_v52  ;;  %v328_v56 = vmul.f32 0.5, %v325_v52 }
 0x198   :  { %489 = verf.f32 %v329_v54 }
 0x1a5   :  { %v490_v55 = vpop.eup %489 }
 0x1a6   :  { %v331_v57 = vadd.f32 1.0, %v490_v55 }
 0x1a8   :  { %v332_v58 = vmul.f32 %v331_v57, %v328_v56 }
 0x1aa   :  { %468 = vmatmul.mubr.msk.f32.vlgmr.msra.gmra.mxu1 %vm254_vm2, %v332_v58 }
 0x26a   :  { %v406_v59 = vpop.f32.mrf.mxu1 }
 0x26b   :  { %v407_v60 = vadd.f32 %v436_v3, %v406_v59 }
 0x26c   :  { %v469_v61 = vpop.f32.mrf.mxu1 }
 0x26d   :  { %410 = vst.msk [vmem:[#allocation2] sm:$0xff] %vm254_vm2, %v407_v60 }
 0x26e   :  { %502 = shalt.err (!%p499_p4)
}
 0x26f   :  { %420 = dma.vmem_to_hbm [thread:$0]  %s418_s8, 128, %s620_s3, [#allocation3]  }
 0x270   :  { %511 = dma.done.wait [#allocation3], 128  }
 0x271   :  { %512 = vsyncadd [#allocation3], 4294967168 }
 0x272   :  { %424 = vsyncpa [#allocation3], 1 }

</bundles_post_ra>
